<compile_context>
chip_gen: v6e
topology: v6e:2x2x1
jax: 0.10.0
libtpu: 0.0.40
codegen_flags: <defaults>
</compile_context>

<pallas_src>
import math
import functools

import jax
import jax.numpy as jnp
from jax.experimental import pallas as pl
from jax.experimental.pallas import tpu as pltpu


def _encoder_kernel(bb, seq_len, embed_dim, num_heads, head_dim,
                    x_ref, pe_ref,
                    wq_ref, wk_ref, wv_ref,
                    bq_ref, bk_ref, bv_ref,
                    wo_ref, bo_ref,
                    w1_ref, b1_ref, w2_ref, b2_ref,
                    o_ref,
                    xr_sc, acc_sc):
    f32 = jnp.float32
    bf16 = jnp.bfloat16
    rows = bb * seq_len
    h = pl.program_id(1)

    # ---- once per batch block: positional encoding + zero the accumulator ----
    @pl.when(h == 0)
    def _():
        x = x_ref[...] + pe_ref[...][None, :, :]              # (bb, T, E) f32
        xr_sc[...] = x.reshape(rows, embed_dim).astype(bf16)  # (R, E) bf16
        acc_sc[...] = jnp.zeros_like(acc_sc)

    xr = xr_sc[...]                                            # (R, E) bf16

    # ---- per-head Q/K/V projection (weights arrive per head via BlockSpec) ---
    # w*_ref blocks are (1, hd, E): rows = this head's output features.
    wq = wq_ref[0]                                             # (hd, E) bf16
    wk = wk_ref[0]
    wv = wv_ref[0]
    q = jnp.einsum("re,de->rd", xr, wq, preferred_element_type=f32) + bq_ref[0]
    k = jnp.einsum("re,de->rd", xr, wk, preferred_element_type=f32) + bk_ref[0]
    v = jnp.einsum("re,de->rd", xr, wv, preferred_element_type=f32) + bv_ref[0]

    qh = q.reshape(bb, seq_len, head_dim).astype(bf16)         # (bb, T, hd)
    kh = k.reshape(bb, seq_len, head_dim).astype(bf16)
    vh = v.reshape(bb, seq_len, head_dim).astype(bf16)

    # ---- scaled dot-product attention for this head, batched over bb ---------
    scale = 1.0 / math.sqrt(head_dim)
    s = jnp.einsum("btd,bsd->bts", qh, kh, preferred_element_type=f32) * scale
    s = s - jnp.max(s, axis=-1, keepdims=True)
    p = jnp.exp(s)
    denom = jnp.sum(p, axis=-1, keepdims=True)
    p = p * pl.reciprocal(denom, approx=True)                  # softmax(-1), EUP
    ctx = jnp.einsum("bts,bsd->btd", p.astype(bf16), vh,
                     preferred_element_type=f32)               # (bb, T, hd)

    # ---- fold this head straight into the output projection ------------------
    ctx2 = ctx.reshape(rows, head_dim).astype(bf16)            # (R, hd)
    acc_sc[...] += jnp.dot(ctx2, wo_ref[0], preferred_element_type=f32)

    # ---- last head: output bias, position-wise FFN, write the output block ---
    @pl.when(h == pl.num_programs(1) - 1)
    def _():
        attn = acc_sc[...] + bo_ref[...]                       # (R, E) f32
        h1 = jnp.dot(attn.astype(bf16), w1_ref[...], preferred_element_type=f32)
        h1 = jnp.maximum(h1 + b1_ref[...], 0.0)                # ReLU in f32
        out = jnp.dot(h1.astype(bf16), w2_ref[...], preferred_element_type=f32)
        out = out + b2_ref[...]                                # (R, E) f32
        o_ref[...] = out.reshape(bb, seq_len, embed_dim).astype(o_ref.dtype)


def _pick_batch_block(batch, seq_len, target_rows=512):
    """Largest divisor bb of batch with bb*T <= target_rows.  Prefer a single
    batch step or an even number of steps (v7x megacore balance); a single big
    step is fine on single-TC v5e/v6e and amortises per-step overhead."""
    divisors = [d for d in range(1, batch + 1) if batch % d == 0]
    fitting = [d for d in divisors if d * seq_len <= target_rows] or [1]
    preferred = [d for d in fitting if batch // d == 1 or (batch // d) % 2 == 0]
    return max(preferred) if preferred else max(fitting)


def _vmem_budget_bytes(bb, T, E, F, hd):
    """Rough peak-VMEM estimate for the chosen block sizes (used for the
    explicit vmem_limit_bytes; defaults are only ~16-32 MiB)."""
    rows = bb * T
    b = 0
    b += 2 * bb * T * E * 4            # x block, double-buffered, f32
    b += 2 * bb * T * E * 4            # out block, double-buffered, f32
    b += T * E * 4                     # pe, single-buffered
    b += 2 * 4 * hd * E * 2            # Wq/Wk/Wv/Wo per-head blocks, 2x buffered, bf16
    b += 2 * 3 * hd * 4                # per-head biases
    b += (E * F + F * E) * 2           # W1, W2 single-buffered bf16
    b += (F + 2 * E) * 4               # b1, b2, bo
    b += rows * E * (2 + 4)            # xr (bf16) + acc (f32) scratches
    # in-flight temporaries: q/k/v, scores/probs, h1, ffn out (all f32)
    b += rows * 3 * hd * 4 + 2 * bb * T * T * 4 + rows * F * 4 + 2 * rows * E * 4
    return b


def transformer_encoder_layer(x, pe, params, num_heads):
    """x: (B, T, E) float32.  pe: (T, E) float32.  params: dict of f32 arrays."""
    B, T, E = x.shape
    assert E % num_heads == 0, "embed_dim must be divisible by num_heads"
    hd = E // num_heads
    F = params["w1"].shape[1]
    bb = _pick_batch_block(B, T)
    rows = bb * T
    nb = B // bb

    bf16 = jnp.bfloat16
    # Head-major weight layouts so each head's block is a clean (hd, E) tile:
    #   wq3[h, d, e] = Wq[e, h*hd + d]   (same for k, v)
    #   wo3[h, d, e] = Wo[h*hd + d, e]
    wq3 = params["wq"].T.reshape(num_heads, hd, E).astype(bf16)
    wk3 = params["wk"].T.reshape(num_heads, hd, E).astype(bf16)
    wv3 = params["wv"].T.reshape(num_heads, hd, E).astype(bf16)
    wo3 = params["wo"].reshape(num_heads, hd, E).astype(bf16)
    bq3 = params["bq"].reshape(num_heads, 1, hd)
    bk3 = params["bk"].reshape(num_heads, 1, hd)
    bv3 = params["bv"].reshape(num_heads, 1, hd)
    w1 = params["w1"].astype(bf16)
    w2 = params["w2"].astype(bf16)
    bo, b1, b2 = params["bo"], params["b1"], params["b2"]

    inputs = (x, pe, wq3, wk3, wv3, bq3, bk3, bv3, wo3, bo, w1, b1, w2, b2)

    def const(shape):          # grid-invariant block: single-buffer (halves VMEM)
        return pl.BlockSpec(shape, lambda b, h: (0,) * len(shape),
                            pipeline_mode=pl.Buffered(1))

    def per_head(shape):       # streamed per head: keep default double-buffering
        return pl.BlockSpec(shape, lambda b, h: (h,) + (0,) * (len(shape) - 1))

    in_specs = [
        pl.BlockSpec((bb, T, E), lambda b, h: (b, 0, 0)),       # x
        const((T, E)),                                          # pe
        per_head((1, hd, E)),                                   # Wq (per head)
        per_head((1, hd, E)),                                   # Wk
        per_head((1, hd, E)),                                   # Wv
        per_head((1, 1, hd)),                                   # bq
        per_head((1, 1, hd)),                                   # bk
        per_head((1, 1, hd)),                                   # bv
        per_head((1, hd, E)),                                   # Wo (per head)
        const((1, E)),                                          # bo
        const((E, F)), const((1, F)),                           # W1, b1
        const((F, E)), const((1, E)),                           # W2, b2
    ]

    flops = (2 * B * T * E * 3 * E                      # Q/K/V projections
             + 2 * B * num_heads * T * T * hd * 2       # scores + PV
             + 2 * B * T * E * E                        # Wo
             + 4 * B * T * E * F)                       # FFN (two matmuls)
    bytes_accessed = (sum(int(a.size) * a.dtype.itemsize for a in inputs)
                      + B * T * E * x.dtype.itemsize
                      + (nb - 1) * 4 * E * E * 2)       # per-head weight refetch/block
    cost = pl.CostEstimate(flops=int(flops),
                           transcendentals=int(B * num_heads * T * T),
                           bytes_accessed=int(bytes_accessed))

    vmem_limit = _vmem_budget_bytes(bb, T, E, F, hd)
    vmem_limit = max(int(vmem_limit * 1.5) + (4 << 20), 32 << 20)
    vmem_limit = min(vmem_limit, 96 << 20)

    kernel = functools.partial(_encoder_kernel, bb, T, E, num_heads, hd)

    return pl.pallas_call(
        kernel,
        out_shape=jax.ShapeDtypeStruct((B, T, E), x.dtype),
        grid=(nb, num_heads),
        in_specs=in_specs,
        out_specs=pl.BlockSpec((bb, T, E), lambda b, h: (b, 0, 0)),
        scratch_shapes=[pltpu.VMEM((rows, E), jnp.bfloat16),    # x + PE (bf16)
                        pltpu.VMEM((rows, E), jnp.float32)],    # Wo accumulator
        compiler_params=pltpu.CompilerParams(
            dimension_semantics=("parallel", "arbitrary"),
            vmem_limit_bytes=int(vmem_limit)),
        cost_estimate=cost,
    )(*inputs)


def make_positional_encoding(embed_dim, max_len):
    position = jnp.arange(max_len, dtype=jnp.float32)[:, None]            # (L, 1)
    div_term = jnp.exp(jnp.arange(0, embed_dim, 2, dtype=jnp.float32)
                       * -(jnp.log(10000.0) / embed_dim))                 # (E/2,)
    pe = jnp.zeros((max_len, embed_dim), dtype=jnp.float32)
    pe = pe.at[:, 0::2].set(jnp.sin(position * div_term))
    pe = pe.at[:, 1::2].set(jnp.cos(position * div_term))
    return pe                                                             # (L, E)


def init_params(key, embed_dim, ff_dim):
    keys = jax.random.split(key, 6)
    s = 0.1
    return {
        "wq": s * jax.random.normal(keys[0], (embed_dim, embed_dim), jnp.float32),
        "wk": s * jax.random.normal(keys[1], (embed_dim, embed_dim), jnp.float32),
        "wv": s * jax.random.normal(keys[2], (embed_dim, embed_dim), jnp.float32),
        "wo": s * jax.random.normal(keys[3], (embed_dim, embed_dim), jnp.float32),
        "w1": s * jax.random.normal(keys[4], (embed_dim, ff_dim), jnp.float32),
        "w2": s * jax.random.normal(keys[5], (ff_dim, embed_dim), jnp.float32),
        "bq": jnp.full((1, embed_dim), 0.01, jnp.float32),
        "bk": jnp.full((1, embed_dim), 0.02, jnp.float32),
        "bv": jnp.full((1, embed_dim), 0.03, jnp.float32),
        "bo": jnp.full((1, embed_dim), 0.04, jnp.float32),
        "b1": jnp.full((1, ff_dim), 0.05, jnp.float32),
        "b2": jnp.full((1, embed_dim), 0.06, jnp.float32),
    }


def reference_forward(x, pe, params, num_heads):
    """Pure-JAX f32 reference mirroring the PyTorch forward (PE -> MHA -> FFN)."""
    B, T, E = x.shape
    hd = E // num_heads
    x = x + pe[None, :T]
    q = x @ params["wq"] + params["bq"]
    k = x @ params["wk"] + params["bk"]
    v = x @ params["wv"] + params["bv"]

    def split(a):  # (B, T, E) -> (B, H, T, hd)
        return a.reshape(B, T, num_heads, hd).transpose(0, 2, 1, 3)

    q, k, v = split(q), split(k), split(v)
    scores = jnp.einsum("bhqd,bhkd->bhqk", q, k) / math.sqrt(hd)
    w = jax.nn.softmax(scores, axis=-1)
    o = jnp.einsum("bhqk,bhkd->bhqd", w, v)
    o = o.transpose(0, 2, 1, 3).reshape(B, T, E)
    o = o @ params["wo"] + params["bo"]
    h1 = jnp.maximum(o @ params["w1"] + params["b1"], 0.0)
    return h1 @ params["w2"] + params["b2"]


if __name__ == "__main__":
    B, T, E = 2, 8, 32
    num_heads = 4
    ff_dim = 64
    max_len = 16

    key = jax.random.PRNGKey(0)
    kx, kp = jax.random.split(key)
    x = jax.random.normal(kx, (B, T, E), dtype=jnp.float32)
    params = init_params(kp, E, ff_dim)
    pe_full = make_positional_encoding(E, max_len)
    pe = pe_full[:T]                                    # (T, E) slice used by fwd

    out = transformer_encoder_layer(x, pe, params, num_heads)
    out = jax.block_until_ready(out)

    ref = reference_forward(x, pe_full, params, num_heads)
    assert out.shape == (B, T, E)
    # bf16 matmul inputs + approx reciprocal vs. f32 reference -> loose-ish tol.
    assert jnp.allclose(out, ref, rtol=3e-2, atol=3e-2), "mismatch vs reference"

    print("KERNEL_OK")
</pallas_src>

<mosaic_0001>
module attributes {stable_mosaic.version = 11 : i64} {
  func.func @_encoder_kernel(%arg0: i32, %arg1: i32, %arg2: memref<2x8x32xf32, #tpu.memory_space<vmem>>, %arg3: memref<8x32xf32, #tpu.memory_space<vmem>>, %arg4: memref<1x8x32xbf16, #tpu.memory_space<vmem>>, %arg5: memref<1x8x32xbf16, #tpu.memory_space<vmem>>, %arg6: memref<1x8x32xbf16, #tpu.memory_space<vmem>>, %arg7: memref<1x1x8xf32, #tpu.memory_space<vmem>>, %arg8: memref<1x1x8xf32, #tpu.memory_space<vmem>>, %arg9: memref<1x1x8xf32, #tpu.memory_space<vmem>>, %arg10: memref<1x8x32xbf16, #tpu.memory_space<vmem>>, %arg11: memref<1x32xf32, #tpu.memory_space<vmem>>, %arg12: memref<32x64xbf16, #tpu.memory_space<vmem>>, %arg13: memref<1x64xf32, #tpu.memory_space<vmem>>, %arg14: memref<64x32xbf16, #tpu.memory_space<vmem>>, %arg15: memref<1x32xf32, #tpu.memory_space<vmem>>, %arg16: memref<2x8x32xf32, #tpu.memory_space<vmem>>, %arg17: memref<16x32xbf16, #tpu.memory_space<vmem>>, %arg18: memref<16x32xf32, #tpu.memory_space<vmem>>) attributes {dimension_semantics = [#tpu.dimension_semantics<parallel>, #tpu.dimension_semantics<arbitrary>], iteration_bounds = array<i64: 1, 4>, scalar_prefetch = 0 : i64, scratch_operands = 2 : i64, tpu.core_type = #tpu.core_type<tc>, window_params = [{transform_indices = @transform_0, window_bounds = array<i64: 2, 8, 32>}, {pipeline_mode = #tpu.pipeline_mode<synchronous>, transform_indices = @transform_1, window_bounds = array<i64: 8, 32>}, {transform_indices = @transform_2, window_bounds = array<i64: 1, 8, 32>}, {transform_indices = @transform_3, window_bounds = array<i64: 1, 8, 32>}, {transform_indices = @transform_4, window_bounds = array<i64: 1, 8, 32>}, {transform_indices = @transform_5, window_bounds = array<i64: 1, 1, 8>}, {transform_indices = @transform_6, window_bounds = array<i64: 1, 1, 8>}, {transform_indices = @transform_7, window_bounds = array<i64: 1, 1, 8>}, {transform_indices = @transform_8, window_bounds = array<i64: 1, 8, 32>}, {pipeline_mode = #tpu.pipeline_mode<synchronous>, transform_indices = @transform_9, window_bounds = array<i64: 1, 32>}, {pipeline_mode = #tpu.pipeline_mode<synchronous>, transform_indices = @transform_10, window_bounds = array<i64: 32, 64>}, {pipeline_mode = #tpu.pipeline_mode<synchronous>, transform_indices = @transform_11, window_bounds = array<i64: 1, 64>}, {pipeline_mode = #tpu.pipeline_mode<synchronous>, transform_indices = @transform_12, window_bounds = array<i64: 64, 32>}, {pipeline_mode = #tpu.pipeline_mode<synchronous>, transform_indices = @transform_13, window_bounds = array<i64: 1, 32>}, {transform_indices = @transform_14, window_bounds = array<i64: 2, 8, 32>}]} {
    %c0_i32 = arith.constant 0 : i32
    %0 = arith.cmpi eq, %arg1, %c0_i32 : i32
    %1 = arith.extui %0 : i1 to i32
    %c0_i32_0 = arith.constant 0 : i32
    %2 = arith.cmpi ne, %1, %c0_i32_0 : i32
    scf.if %2 {
      %c0_36 = arith.constant 0 : index
      %c0_37 = arith.constant 0 : index
      %c0_38 = arith.constant 0 : index
      %57 = vector.load %arg2[%c0_36, %c0_37, %c0_38] : memref<2x8x32xf32, #tpu.memory_space<vmem>>, vector<2x8x32xf32>
      %c0_39 = arith.constant 0 : index
      %c0_40 = arith.constant 0 : index
      %58 = vector.load %arg3[%c0_39, %c0_40] : memref<8x32xf32, #tpu.memory_space<vmem>>, vector<8x32xf32>
      %59 = vector.shape_cast %58 : vector<8x32xf32> to vector<1x8x32xf32>
      %60 = vector.broadcast %59 : vector<1x8x32xf32> to vector<2x8x32xf32>
      %61 = arith.addf %57, %60 : vector<2x8x32xf32>
      %62 = vector.shape_cast %61 : vector<2x8x32xf32> to vector<16x32xf32>
      %63 = arith.truncf %62 : vector<16x32xf32> to vector<16x32xbf16>
      %c0_41 = arith.constant 0 : index
      %c0_42 = arith.constant 0 : index
      %64 = vector.load %arg17[%c0_41, %c0_42] : memref<16x32xbf16, #tpu.memory_space<vmem>>, vector<16x32xbf16>
      tpu.vector_store %arg17[%c0_41, %c0_42], %63 {strides = array<i32>} : memref<16x32xbf16, #tpu.memory_space<vmem>>, vector<16x32xbf16>,
      %cst_43 = arith.constant 0.000000e+00 : f32
      %65 = vector.broadcast %cst_43 : f32 to vector<16x32xf32>
      %c0_44 = arith.constant 0 : index
      %c0_45 = arith.constant 0 : index
      %66 = vector.load %arg18[%c0_44, %c0_45] : memref<16x32xf32, #tpu.memory_space<vmem>>, vector<16x32xf32>
      tpu.vector_store %arg18[%c0_44, %c0_45], %65 {strides = array<i32>} : memref<16x32xf32, #tpu.memory_space<vmem>>, vector<16x32xf32>,
    } else {
    }
    %c0 = arith.constant 0 : index
    %c0_1 = arith.constant 0 : index
    %3 = vector.load %arg17[%c0, %c0_1] : memref<16x32xbf16, #tpu.memory_space<vmem>>, vector<16x32xbf16>
    %c0_2 = arith.constant 0 : index
    %c0_3 = arith.constant 0 : index
    %c0_4 = arith.constant 0 : index
    %4 = vector.load %arg4[%c0_2, %c0_3, %c0_4] : memref<1x8x32xbf16, #tpu.memory_space<vmem>>, vector<1x8x32xbf16>
    %5 = vector.shape_cast %4 : vector<1x8x32xbf16> to vector<8x32xbf16>
    %c0_5 = arith.constant 0 : index
    %c0_6 = arith.constant 0 : index
    %c0_7 = arith.constant 0 : index
    %6 = vector.load %arg5[%c0_5, %c0_6, %c0_7] : memref<1x8x32xbf16, #tpu.memory_space<vmem>>, vector<1x8x32xbf16>
    %7 = vector.shape_cast %6 : vector<1x8x32xbf16> to vector<8x32xbf16>
    %c0_8 = arith.constant 0 : index
    %c0_9 = arith.constant 0 : index
    %c0_10 = arith.constant 0 : index
    %8 = vector.load %arg6[%c0_8, %c0_9, %c0_10] : memref<1x8x32xbf16, #tpu.memory_space<vmem>>, vector<1x8x32xbf16>
    %9 = vector.shape_cast %8 : vector<1x8x32xbf16> to vector<8x32xbf16>
    "tpu.trace_start"() <{level = 10 : i32, message = "re,de->rd"}> : () -> ()
    %cst = arith.constant dense<0.000000e+00> : vector<16x8xf32>
    %10 = tpu.matmul %3, %5, %cst {dimension_numbers = #tpu.dot_dimension_numbers<[1], [1], [0], [0], [0, 0, 1, 0], [], []>} : vector<16x32xbf16>, vector<8x32xbf16>, vector<16x8xf32> -> vector<16x8xf32>
    "tpu.trace_stop"() : () -> ()
    %c0_11 = arith.constant 0 : index
    %c0_12 = arith.constant 0 : index
    %c0_13 = arith.constant 0 : index
    %11 = vector.load %arg7[%c0_11, %c0_12, %c0_13] : memref<1x1x8xf32, #tpu.memory_space<vmem>>, vector<1x1x8xf32>
    %12 = vector.shape_cast %11 : vector<1x1x8xf32> to vector<1x8xf32>
    %13 = vector.broadcast %12 : vector<1x8xf32> to vector<16x8xf32>
    %14 = arith.addf %10, %13 : vector<16x8xf32>
    "tpu.trace_start"() <{level = 10 : i32, message = "re,de->rd"}> : () -> ()
    %cst_14 = arith.constant dense<0.000000e+00> : vector<16x8xf32>
    %15 = tpu.matmul %3, %7, %cst_14 {dimension_numbers = #tpu.dot_dimension_numbers<[1], [1], [0], [0], [0, 0, 1, 0], [], []>} : vector<16x32xbf16>, vector<8x32xbf16>, vector<16x8xf32> -> vector<16x8xf32>
    "tpu.trace_stop"() : () -> ()
    %c0_15 = arith.constant 0 : index
    %c0_16 = arith.constant 0 : index
    %c0_17 = arith.constant 0 : index
    %16 = vector.load %arg8[%c0_15, %c0_16, %c0_17] : memref<1x1x8xf32, #tpu.memory_space<vmem>>, vector<1x1x8xf32>
    %17 = vector.shape_cast %16 : vector<1x1x8xf32> to vector<1x8xf32>
    %18 = vector.broadcast %17 : vector<1x8xf32> to vector<16x8xf32>
    %19 = arith.addf %15, %18 : vector<16x8xf32>
    "tpu.trace_start"() <{level = 10 : i32, message = "re,de->rd"}> : () -> ()
    %cst_18 = arith.constant dense<0.000000e+00> : vector<16x8xf32>
    %20 = tpu.matmul %3, %9, %cst_18 {dimension_numbers = #tpu.dot_dimension_numbers<[1], [1], [0], [0], [0, 0, 1, 0], [], []>} : vector<16x32xbf16>, vector<8x32xbf16>, vector<16x8xf32> -> vector<16x8xf32>
    "tpu.trace_stop"() : () -> ()
    %c0_19 = arith.constant 0 : index
    %c0_20 = arith.constant 0 : index
    %c0_21 = arith.constant 0 : index
    %21 = vector.load %arg9[%c0_19, %c0_20, %c0_21] : memref<1x1x8xf32, #tpu.memory_space<vmem>>, vector<1x1x8xf32>
    %22 = vector.shape_cast %21 : vector<1x1x8xf32> to vector<1x8xf32>
    %23 = vector.broadcast %22 : vector<1x8xf32> to vector<16x8xf32>
    %24 = arith.addf %20, %23 : vector<16x8xf32>
    %25 = vector.shape_cast %14 : vector<16x8xf32> to vector<2x8x8xf32>
    %26 = arith.truncf %25 : vector<2x8x8xf32> to vector<2x8x8xbf16>
    %27 = vector.shape_cast %19 : vector<16x8xf32> to vector<2x8x8xf32>
    %28 = arith.truncf %27 : vector<2x8x8xf32> to vector<2x8x8xbf16>
    %29 = vector.shape_cast %24 : vector<16x8xf32> to vector<2x8x8xf32>
    %30 = arith.truncf %29 : vector<2x8x8xf32> to vector<2x8x8xbf16>
    "tpu.trace_start"() <{level = 10 : i32, message = "btd,bsd->bts"}> : () -> ()
    %cst_22 = arith.constant dense<0.000000e+00> : vector<2x8x8xf32>
    %31 = tpu.matmul %26, %28, %cst_22 {dimension_numbers = #tpu.dot_dimension_numbers<[2], [2], [1], [1], [0, 0, 0, 1, 1, 1], [0], [0]>} : vector<2x8x8xbf16>, vector<2x8x8xbf16>, vector<2x8x8xf32> -> vector<2x8x8xf32>
    "tpu.trace_stop"() : () -> ()
    %cst_23 = arith.constant 0.353553385 : f32
    %32 = vector.broadcast %cst_23 : f32 to vector<2x8x8xf32>
    %33 = arith.mulf %31, %32 : vector<2x8x8xf32>
    %cst_24 = arith.constant dense<0xFF800000> : vector<2x8xf32>
    %34 = vector.multi_reduction <maximumf>, %33, %cst_24 [2] : vector<2x8x8xf32> to vector<2x8xf32>
    %35 = vector.shape_cast %34 : vector<2x8xf32> to vector<2x8x1xf32>
    %36 = vector.broadcast %35 : vector<2x8x1xf32> to vector<2x8x8xf32>
    %37 = arith.subf %33, %36 : vector<2x8x8xf32>
    %38 = math.exp %37 : vector<2x8x8xf32>
    %cst_25 = arith.constant dense<0.000000e+00> : vector<2x8xf32>
    %39 = vector.multi_reduction <add>, %38, %cst_25 [2] : vector<2x8x8xf32> to vector<2x8xf32>
    %40 = vector.shape_cast %39 : vector<2x8xf32> to vector<2x8x1xf32>
    %41 = tpu.reciprocal %40 {approx = true} : vector<2x8x1xf32> -> vector<2x8x1xf32>
    %42 = vector.broadcast %41 : vector<2x8x1xf32> to vector<2x8x8xf32>
    %43 = arith.mulf %38, %42 : vector<2x8x8xf32>
    %44 = arith.truncf %43 : vector<2x8x8xf32> to vector<2x8x8xbf16>
    "tpu.trace_start"() <{level = 10 : i32, message = "bts,bsd->btd"}> : () -> ()
    %cst_26 = arith.constant dense<0.000000e+00> : vector<2x8x8xf32>
    %45 = tpu.matmul %44, %30, %cst_26 {dimension_numbers = #tpu.dot_dimension_numbers<[2], [1], [1], [2], [0, 0, 0, 1, 1, 2], [0], [0]>} : vector<2x8x8xbf16>, vector<2x8x8xbf16>, vector<2x8x8xf32> -> vector<2x8x8xf32>
    "tpu.trace_stop"() : () -> ()
    %46 = vector.shape_cast %45 : vector<2x8x8xf32> to vector<16x8xf32>
    %47 = arith.truncf %46 : vector<16x8xf32> to vector<16x8xbf16>
    %c0_27 = arith.constant 0 : index
    %c0_28 = arith.constant 0 : index
    %48 = vector.load %arg18[%c0_27, %c0_28] : memref<16x32xf32, #tpu.memory_space<vmem>>, vector<16x32xf32>
    %c0_29 = arith.constant 0 : index
    %c0_30 = arith.constant 0 : index
    %c0_31 = arith.constant 0 : index
    %49 = vector.load %arg10[%c0_29, %c0_30, %c0_31] : memref<1x8x32xbf16, #tpu.memory_space<vmem>>, vector<1x8x32xbf16>
    %50 = vector.shape_cast %49 : vector<1x8x32xbf16> to vector<8x32xbf16>
    %cst_32 = arith.constant dense<0.000000e+00> : vector<16x32xf32>
    %51 = tpu.matmul %47, %50, %cst_32 {dimension_numbers = #tpu.dot_dimension_numbers<[1], [0], [0], [1], [0, 0, 1, 1], [], []>} : vector<16x8xbf16>, vector<8x32xbf16>, vector<16x32xf32> -> vector<16x32xf32>
    %52 = arith.addf %48, %51 : vector<16x32xf32>
    %c0_33 = arith.constant 0 : index
    %c0_34 = arith.constant 0 : index
    %53 = vector.load %arg18[%c0_33, %c0_34] : memref<16x32xf32, #tpu.memory_space<vmem>>, vector<16x32xf32>
    tpu.vector_store %arg18[%c0_33, %c0_34], %52 {strides = array<i32>} : memref<16x32xf32, #tpu.memory_space<vmem>>, vector<16x32xf32>,
    %c3_i32 = arith.constant 3 : i32
    %54 = arith.cmpi eq, %arg1, %c3_i32 : i32
    %55 = arith.extui %54 : i1 to i32
    %c0_i32_35 = arith.constant 0 : i32
    %56 = arith.cmpi ne, %55, %c0_i32_35 : i32
    scf.if %56 {
      %c0_36 = arith.constant 0 : index
      %c0_37 = arith.constant 0 : index
      %57 = vector.load %arg18[%c0_36, %c0_37] : memref<16x32xf32, #tpu.memory_space<vmem>>, vector<16x32xf32>
      %c0_38 = arith.constant 0 : index
      %c0_39 = arith.constant 0 : index
      %58 = vector.load %arg11[%c0_38, %c0_39] : memref<1x32xf32, #tpu.memory_space<vmem>>, vector<1x32xf32>
      %59 = vector.broadcast %58 : vector<1x32xf32> to vector<16x32xf32>
      %60 = arith.addf %57, %59 : vector<16x32xf32>
      %61 = arith.truncf %60 : vector<16x32xf32> to vector<16x32xbf16>
      %c0_40 = arith.constant 0 : index
      %c0_41 = arith.constant 0 : index
      %62 = vector.load %arg12[%c0_40, %c0_41] : memref<32x64xbf16, #tpu.memory_space<vmem>>, vector<32x64xbf16>
      %cst_42 = arith.constant dense<0.000000e+00> : vector<16x64xf32>
      %63 = tpu.matmul %61, %62, %cst_42 {dimension_numbers = #tpu.dot_dimension_numbers<[1], [0], [0], [1], [0, 0, 1, 1], [], []>} : vector<16x32xbf16>, vector<32x64xbf16>, vector<16x64xf32> -> vector<16x64xf32>
      %c0_43 = arith.constant 0 : index
      %c0_44 = arith.constant 0 : index
      %64 = vector.load %arg13[%c0_43, %c0_44] : memref<1x64xf32, #tpu.memory_space<vmem>>, vector<1x64xf32>
      %65 = vector.broadcast %64 : vector<1x64xf32> to vector<16x64xf32>
      %66 = arith.addf %63, %65 : vector<16x64xf32>
      %cst_45 = arith.constant 0.000000e+00 : f32
      %67 = vector.broadcast %cst_45 : f32 to vector<16x64xf32>
      %68 = arith.maximumf %66, %67 : vector<16x64xf32>
      %69 = arith.truncf %68 : vector<16x64xf32> to vector<16x64xbf16>
      %c0_46 = arith.constant 0 : index
      %c0_47 = arith.constant 0 : index
      %70 = vector.load %arg14[%c0_46, %c0_47] : memref<64x32xbf16, #tpu.memory_space<vmem>>, vector<64x32xbf16>
      %cst_48 = arith.constant dense<0.000000e+00> : vector<16x32xf32>
      %71 = tpu.matmul %69, %70, %cst_48 {dimension_numbers = #tpu.dot_dimension_numbers<[1], [0], [0], [1], [0, 0, 1, 1], [], []>} : vector<16x64xbf16>, vector<64x32xbf16>, vector<16x32xf32> -> vector<16x32xf32>
      %c0_49 = arith.constant 0 : index
      %c0_50 = arith.constant 0 : index
      %72 = vector.load %arg15[%c0_49, %c0_50] : memref<1x32xf32, #tpu.memory_space<vmem>>, vector<1x32xf32>
      %73 = vector.broadcast %72 : vector<1x32xf32> to vector<16x32xf32>
      %74 = arith.addf %71, %73 : vector<16x32xf32>
      %75 = vector.shape_cast %74 : vector<16x32xf32> to vector<2x8x32xf32>
      %c0_51 = arith.constant 0 : index
      %c0_52 = arith.constant 0 : index
      %c0_53 = arith.constant 0 : index
      %76 = vector.load %arg16[%c0_51, %c0_52, %c0_53] : memref<2x8x32xf32, #tpu.memory_space<vmem>>, vector<2x8x32xf32>
      tpu.vector_store %arg16[%c0_51, %c0_52, %c0_53], %75 {strides = array<i32>} : memref<2x8x32xf32, #tpu.memory_space<vmem>>, vector<2x8x32xf32>,
    } else {
    }
    return
  }
  func.func @transform_0(%arg0: i32, %arg1: i32) -> (i32, i32, i32) {
    %c0_i32 = arith.constant 0 : i32
    %c0_i32_0 = arith.constant 0 : i32
    %c0_i32_1 = arith.constant 0 : i32
    return %arg0, %c0_i32, %c0_i32_0 : i32, i32, i32
  }
  func.func @transform_1(%arg0: i32, %arg1: i32) -> (i32, i32) {
    %c0_i32 = arith.constant 0 : i32
    %c0_i32_0 = arith.constant 0 : i32
    %c0_i32_1 = arith.constant 0 : i32
    return %c0_i32, %c0_i32_0 : i32, i32
  }
  func.func @transform_2(%arg0: i32, %arg1: i32) -> (i32, i32, i32) {
    %c0_i32 = arith.constant 0 : i32
    %c0_i32_0 = arith.constant 0 : i32
    %c0_i32_1 = arith.constant 0 : i32
    return %arg1, %c0_i32, %c0_i32_0 : i32, i32, i32
  }
  func.func @transform_3(%arg0: i32, %arg1: i32) -> (i32, i32, i32) {
    %c0_i32 = arith.constant 0 : i32
    %c0_i32_0 = arith.constant 0 : i32
    %c0_i32_1 = arith.constant 0 : i32
    return %arg1, %c0_i32, %c0_i32_0 : i32, i32, i32
  }
  func.func @transform_4(%arg0: i32, %arg1: i32) -> (i32, i32, i32) {
    %c0_i32 = arith.constant 0 : i32
    %c0_i32_0 = arith.constant 0 : i32
    %c0_i32_1 = arith.constant 0 : i32
    return %arg1, %c0_i32, %c0_i32_0 : i32, i32, i32
  }
  func.func @transform_5(%arg0: i32, %arg1: i32) -> (i32, i32, i32) {
    %c0_i32 = arith.constant 0 : i32
    %c0_i32_0 = arith.constant 0 : i32
    %c0_i32_1 = arith.constant 0 : i32
    return %arg1, %c0_i32, %c0_i32_0 : i32, i32, i32
  }
  func.func @transform_6(%arg0: i32, %arg1: i32) -> (i32, i32, i32) {
    %c0_i32 = arith.constant 0 : i32
    %c0_i32_0 = arith.constant 0 : i32
    %c0_i32_1 = arith.constant 0 : i32
    return %arg1, %c0_i32, %c0_i32_0 : i32, i32, i32
  }
  func.func @transform_7(%arg0: i32, %arg1: i32) -> (i32, i32, i32) {
    %c0_i32 = arith.constant 0 : i32
    %c0_i32_0 = arith.constant 0 : i32
    %c0_i32_1 = arith.constant 0 : i32
    return %arg1, %c0_i32, %c0_i32_0 : i32, i32, i32
  }
  func.func @transform_8(%arg0: i32, %arg1: i32) -> (i32, i32, i32) {
    %c0_i32 = arith.constant 0 : i32
    %c0_i32_0 = arith.constant 0 : i32
    %c0_i32_1 = arith.constant 0 : i32
    return %arg1, %c0_i32, %c0_i32_0 : i32, i32, i32
  }
  func.func @transform_9(%arg0: i32, %arg1: i32) -> (i32, i32) {
    %c0_i32 = arith.constant 0 : i32
    %c0_i32_0 = arith.constant 0 : i32
    %c0_i32_1 = arith.constant 0 : i32
    return %c0_i32, %c0_i32_0 : i32, i32
  }
  func.func @transform_10(%arg0: i32, %arg1: i32) -> (i32, i32) {
    %c0_i32 = arith.constant 0 : i32
    %c0_i32_0 = arith.constant 0 : i32
    %c0_i32_1 = arith.constant 0 : i32
    return %c0_i32, %c0_i32_0 : i32, i32
  }
  func.func @transform_11(%arg0: i32, %arg1: i32) -> (i32, i32) {
    %c0_i32 = arith.constant 0 : i32
    %c0_i32_0 = arith.constant 0 : i32
    %c0_i32_1 = arith.constant 0 : i32
    return %c0_i32, %c0_i32_0 : i32, i32
  }
  func.func @transform_12(%arg0: i32, %arg1: i32) -> (i32, i32) {
    %c0_i32 = arith.constant 0 : i32
    %c0_i32_0 = arith.constant 0 : i32
    %c0_i32_1 = arith.constant 0 : i32
    return %c0_i32, %c0_i32_0 : i32, i32
  }
  func.func @transform_13(%arg0: i32, %arg1: i32) -> (i32, i32) {
    %c0_i32 = arith.constant 0 : i32
    %c0_i32_0 = arith.constant 0 : i32
    %c0_i32_1 = arith.constant 0 : i32
    return %c0_i32, %c0_i32_0 : i32, i32
  }
  func.func @transform_14(%arg0: i32, %arg1: i32) -> (i32, i32, i32) {
    %c0_i32 = arith.constant 0 : i32
    %c0_i32_0 = arith.constant 0 : i32
    %c0_i32_1 = arith.constant 0 : i32
    return %arg0, %c0_i32, %c0_i32_0 : i32, i32, i32
  }
}

</mosaic_0001>

<bundles_post_ra>
// kernel: tpu_custom_call.1
= control target key start
LH: loop header
LB: loop body
LE: loop exit
PB: predicated region body
PF: predicated region fallthrough
CT: control target
= control target key end

     0   :  { %s2538_s0 = inlined_call_operand.vmem [shape: f32[2,8,32], index: 0, kind: input, shape index: {}]   ;;  %s2539_s1 = inlined_call_operand.hbm [shape: f32[8,32], index: 1, kind: input, shape index: {}]   ;;  %s2540_s2 = inlined_call_operand.vmem [shape: bf16[4,8,32], index: 2, kind: input, shape index: {}]   ;;  %s2541_s3 = inlined_call_operand.vmem [shape: bf16[4,8,32], index: 3, kind: input, shape index: {}]   ;;  %s2542_s4 = inlined_call_operand.hbm [shape: bf16[4,8,32], index: 4, kind: input, shape index: {}]   ;;  %s2543_s5 = inlined_call_operand.hbm [shape: f32[4,1,8], index: 5, kind: input, shape index: {}]   ;;  %s2544_s6 = inlined_call_operand.hbm [shape: f32[4,1,8], index: 6, kind: input, shape index: {}]   ;;  %s2545_s7 = inlined_call_operand.hbm [shape: f32[4,1,8], index: 7, kind: input, shape index: {}]   ;;  %s2546_s8 = inlined_call_operand.hbm [shape: bf16[4,8,32], index: 8, kind: input, shape index: {}]   ;;  %s2547_s9 = inlined_call_operand.hbm [shape: f32[1,32], index: 9, kind: input, shape index: {}]   ;;  %s2548_s10 = inlined_call_operand.vmem [shape: bf16[32,64], index: 10, kind: input, shape index: {}]   ;;  %s2549_s11 = inlined_call_operand.vmem [shape: f32[1,64], index: 11, kind: input, shape index: {}]   ;;  %s2550_s12 = inlined_call_operand.vmem [shape: bf16[64,32], index: 12, kind: input, shape index: {}]   ;;  %s2551_s13 = inlined_call_operand.vmem [shape: f32[1,32], index: 13, kind: input, shape index: {}]   ;;  %s2552_s14 = inlined_call_operand.hbm [shape: f32[2,8,32], index: 14, kind: output, shape index: {}]  }
   0x1   :  { %2560 = sst [smem:[#allocation27_spill]] %s2538_s0 }
   0x2   :  { %2561 = sst [smem:[#allocation28_spill]] %s2540_s2 }
   0x3   :  { %2562 = sst [smem:[#allocation29_spill]] %s2541_s3 }
   0x4   :  { %2563 = sst [smem:[#allocation30_spill]] %s2542_s4 }
   0x5   :  { %2564 = sst [smem:[#allocation31_spill]] %s2547_s9 }
   0x6   :  { %2565 = sst [smem:[#allocation32_spill]] %s2548_s10 }
   0x7   :  { %2566 = sst [smem:[#allocation33_spill]] %s2549_s11 }
   0x8   :  { %2567 = sst [smem:[#allocation34_spill]] %s2550_s12 }
   0x9   :  { %2568 = sst [smem:[#allocation35_spill]] %s2551_s13 }
   0xa   :  { %2569 = sst [smem:[#allocation36_spill]] %s2552_s14 }
   0xb   :  { %19 = vsyncpa [#allocation5], 0 }
   0xc   :  { %20 = vsyncpa [#allocation8], 0 }
   0xd   :  { %22 = vsyncpa [#allocation8 + $0x1], 0 }
   0xe   :  { %23 = vsyncpa [#allocation11], 0 }
   0xf   :  { %25 = vsyncpa [#allocation11 + $0x1], 0 }
  0x10   :  { %26 = vsyncpa [#allocation14], 0 }
  0x11   :  { %28 = vsyncpa [#allocation14 + $0x1], 0 }
  0x12   :  { %29 = vsyncpa [#allocation6], 0  ;;  %s2197_s29 = smov 0   ;;  %s2199_s30 = smov 0  }
  0x13   :  { %s2201_s15 = smov 0   ;;  %s2203_s16 = smov 0  }
  0x14   :  { %s2205_s17 = smov 0   ;;  %s2207_s18 = smov 0  }
  0x15 LB: > { %2570 = sst [smem:[#allocation23_spill]] %s2093_s15  ;;  %s2226_s19 = sadd.s32 4294967295, %s2105_s18   ;;  %s2105_s18 = sphi %s2207_s18, %s35_s18   ;;  %s2101_s17 = sphi %s2205_s17, %s2599_s17   ;;  %s2097_s16 = sphi %s2203_s16, %s2598_s16   ;;  %s2093_s15 = sphi %s2201_s15, %s2594_s15   ;;  %s2089_s30 = sphi %s2199_s30, %s2597_s30   ;;  %s2085_s29 = sphi %s2197_s29, %s2596_s29  }
  0x16   : > { %2571 = sst [smem:[#allocation24_spill]] %s2105_s18  ;;  %p160_p0 = scmp.ne.s32.totalorder %s2093_s15, %s2089_s30 }
  0x17   : > { %p161_p1 = scmp.eq.s32.totalorder %s2105_s18, 0  ;;  %p166_p2 = scmp.ne.s32.totalorder %s2089_s30, %s2085_s29 }
  0x18   : > { %p167_p3 = scmp.eq.s32.totalorder %s2226_s19, 0  ;;  %p1550_p4 = scmp.ge.s32.totalorder %s2105_s18, 1 }
  0x19   : > { %p162_p5 = por %p161_p1, %p160_p0  ;;  %p412_p6 = scmp.lt.s32.totalorder %s2105_s18, 5 }
  0x1a   : > { %p2237_p7 = por %p167_p3, %p166_p2  ;;  %s2107_s22 = smov [#allocation15]  }
  0x1b   : > { %p2241_p8 = pnand %p1550_p4, %p412_p6  ;;  %s445_s23 = sshll.u32 %s2107_s22, 4  ;;  %s446_s23 = int_to_ptr.vmem [resolvable:$true] %s445_s23 }
  0x1c   : > { %p1741_p10 = scmp.lt.s32.totalorder %s2105_s18, 4  ;;  %s44_s26 = sadd.s32 1, %s2101_s17 }
  0x1d   : > { %p1716_p9 = pneg %p2241_p8  ;;  %p2259_p13 = scmp.ge.s32.totalorder %s44_s26, 4 }
  0x1e   : > { %p2254_p12 = pnand %p1741_p10, %p162_p5  ;;  %s1830_s28 = scalar_lea.vmem %s446_s23, 16 }
  0x1f   : > { %p2250_p11 = pnand %p1716_p9, %p167_p3  ;;  %p1831_p1 = scmp.ne.s32.totalorder %s446_s23, %s1830_s28 }
  0x20   : > { %s1837_s29 = scalar_lea.vmem %s446_s23, 32  ;;  %p1838_p6 = scmp.lt.s32.totalorder %s446_s23, %s446_s23 }
  0x21   : > { %p1821_p0 = pneg %p2250_p11  ;;  %p1839_p9 = scmp.lt.s32.totalorder %s1837_s29, %s1830_s28 }
  0x23   : > { %p1833_p2 = pnand %p1831_p1, %p1821_p0  ;;  %p1840_p5 = por %p1839_p9, %p1838_p6 }
  0x25   : > { %p1834_p4 = pneg %p1833_p2 }
  0x27   : > { %p1841_p10 = pnand %p1840_p5, %p1834_p4 }
  0x29   : > { %1844 = shalt.err (!%p1841_p10)
}
  0x2a   : > { %s2577_s9 = sld [smem:[#allocation31_spill]]  ;;  %s153_s13 = sadd.s32 1, %s2093_s15 }
  0x2b   : > { %s2601_s26 = smov (%p2259_p13, %s44_s26), 0  ;;  %s2279_s28 = sand.u32 1, %s2105_s18  }
  0x2c   : > { %2578 = sst [smem:[#allocation25_spill]] %s2601_s26  ;;  %s2282_s29 = sand.u32 1, %s2093_s15  }
  0x2d   : > { %s150_s14 = ssub.s32 %s2101_s17, %s2601_s26  ;;  %s2558_s22 = sshll.u32 %s2282_s29, 2 }
  0x2e   : > { %p151_p1 = scmp.eq.s32.totalorder %s150_s14, 0  ;;  %s1556_s11 = sshll.u32 %s2101_s17, 6 }
  0x2f   : > { %s2580_s4 = sld [smem:[#allocation30_spill]]  ;;  %s483_s18 = scalar_lea.sflag [#allocation8], %s2279_s28 }
  0x30   : > { %1722 = dma.hbm_to_vmem [thread:$0]  (!%p2250_p11), %s2577_s9, 16, %s446_s23, [#allocation14]  }
  0x31   : > { %s2289_s12 = scalar_select %p151_p1, %s2093_s15, %s153_s13  }
  0x32   : > { %s486_s9 = scalar_lea.vmem [#allocation7], %s2558_s22  ;;  %p2299_p13 = pneg %p2254_p12 }
  0x33   : > { %2579 = sst [smem:[#allocation26_spill]] %s2289_s12  ;;  %s493_s0 = sshll.u32 %s486_s9, 4  ;;  %s494_s0 = int_to_ptr.vmem [resolvable:$true] %s493_s0 }
  0x34   : > { %s1858_s14 = scalar_lea.vmem %s494_s0, 64  ;;  %s2108_s13 = smov [#allocation7]  }
  0x35   : > { %s491_s27 = scalar_lea.hbm %s2580_s4, %s1556_s11  ;;  %p1859_p2 = scmp.ne.s32.totalorder %s494_s0, %s1858_s14 }
  0x36   : > { %s1863_s26 = sshll.u32 %s2108_s13, 4  ;;  %s1864_s26 = int_to_ptr.vmem [resolvable:$false] %s1863_s26 }
  0x37   : > { %p1861_p4 = pnand %p1859_p2, %p2299_p13  ;;  %s1865_s10 = scalar_lea.vmem %s1864_s26, 128 }
  0x38   : > { %p1866_p9 = scmp.lt.s32.totalorder %s494_s0, %s1864_s26  ;;  %p1867_p5 = scmp.lt.s32.totalorder %s1865_s10, %s1858_s14 }
  0x39   : > { %p1862_p6 = pneg %p1861_p4 }
  0x3a   : > { %p1868_p10 = por %p1867_p5, %p1866_p9 }
  0x3c   : > { %p1869_p1 = pnand %p1868_p10, %p1862_p6 }
  0x3e   : > { %1872 = shalt.err (!%p1869_p1)
}
  0x3f   : > { %1726 = dma.hbm_to_vmem [thread:$0]  (!%p2254_p12), %s491_s27, 64, %s494_s0, %s483_s18  }
  0x40   : > { %s2312_s13 = scalar_lea.hbm %s2546_s8, %s1556_s11  ;;  %s2315_s22 = sshll.u32 %s2101_s17, 4 }
  0x41   : > { %s525_s10 = scalar_lea.hbm %s2544_s6, %s2315_s22  ;;  %s520_s4 = scalar_lea.vmem [#allocation10], %s2282_s29 }
  0x42   : > { %s527_s12 = sshll.u32 %s520_s4, 4  ;;  %s518_s15 = scalar_lea.sflag [#allocation11], %s2279_s28  ;;  %s528_s12 = int_to_ptr.vmem [resolvable:$true] %s527_s12 }
  0x43   : > { %s1886_s2 = scalar_lea.vmem %s528_s12, 16  ;;  %s2109_s0 = smov [#allocation10]  }
  0x44   : > { %p1887_p2 = scmp.ne.s32.totalorder %s528_s12, %s1886_s2  ;;  %s1891_s27 = sshll.u32 %s2109_s0, 4  ;;  %s1892_s27 = int_to_ptr.vmem [resolvable:$false] %s1891_s27 }
  0x45   : > { %s1893_s11 = scalar_lea.vmem %s1892_s27, 32  ;;  %p1894_p9 = scmp.lt.s32.totalorder %s528_s12, %s1892_s27 }
  0x46   : > { %p1889_p4 = pnand %p1887_p2, %p2299_p13  ;;  %p1895_p5 = scmp.lt.s32.totalorder %s1893_s11, %s1886_s2 }
  0x48   : > { %p1890_p6 = pneg %p1889_p4  ;;  %p1896_p10 = por %p1895_p5, %p1894_p9 }
  0x4a   : > { %p1897_p1 = pnand %p1896_p10, %p1890_p6 }
  0x4c   : > { %1900 = shalt.err (!%p1897_p1)
}
  0x4d   : > { %1732 = dma.hbm_to_vmem [thread:$0]  (!%p2254_p12), %s525_s10, 16, %s528_s12, %s518_s15  }
  0x4e   : > { %s2110_s4 = smov [#allocation4]   ;;  %s508_s14 = scalar_lea.hbm %s2543_s5, %s2315_s22 }
  0x4f   : > { %s434_s9 = sshll.u32 %s2110_s4, 4  ;;  %s435_s9 = int_to_ptr.vmem [resolvable:$true] %s434_s9 }
  0x50   : > { %s1912_s0 = scalar_lea.vmem %s435_s9, 128  ;;  %p1920_p9 = scmp.lt.s32.totalorder %s435_s9, %s435_s9 }
  0x51   : > { %p1913_p2 = scmp.ne.s32.totalorder %s435_s9, %s1912_s0  ;;  %p1921_p5 = scmp.lt.s32.totalorder %s1912_s0, %s1912_s0 }
  0x53   : > { %p1915_p4 = pnand %p1913_p2, %p1821_p0  ;;  %p1922_p10 = por %p1921_p5, %p1920_p9 }
  0x55   : > { %p1916_p6 = pneg %p1915_p4 }
  0x57   : > { %p1923_p1 = pnand %p1922_p10, %p1916_p6 }
  0x59   : > { %1926 = shalt.err (!%p1923_p1)
}
  0x5a   : > { %1719 = dma.hbm_to_vmem [thread:$0]  (!%p2250_p11), %s2539_s1, 128, %s435_s9, [#allocation5]  }
  0x5b   : > { %s503_s10 = scalar_lea.vmem [#allocation9], %s2282_s29  ;;  %s2111_s24 = smov [#allocation9]  }
  0x5c   : > { %s510_s27 = sshll.u32 %s503_s10, 4  ;;  %s1945_s0 = sshll.u32 %s2111_s24, 4  ;;  %s511_s27 = int_to_ptr.vmem [resolvable:$true] %s510_s27  ;;  %s1946_s0 = int_to_ptr.vmem [resolvable:$false] %s1945_s0 }
  0x5d   : > { %s1940_s26 = scalar_lea.vmem %s511_s27, 16  ;;  %s1947_s2 = scalar_lea.vmem %s1946_s0, 32 }
  0x5e   : > { %p1941_p0 = scmp.ne.s32.totalorder %s511_s27, %s1940_s26  ;;  %p1948_p6 = scmp.lt.s32.totalorder %s511_s27, %s1946_s0 }
  0x5f   : > { %p1949_p9 = scmp.lt.s32.totalorder %s1947_s2, %s1940_s26 }
  0x60   : > { %p1943_p2 = pnand %p1941_p0, %p2299_p13 }
  0x61   : > { %p1950_p5 = por %p1949_p9, %p1948_p6 }
  0x62   : > { %p1944_p4 = pneg %p1943_p2 }
  0x64   : > { %p1951_p11 = pnand %p1950_p5, %p1944_p4 }
  0x66   : > { %1954 = shalt.err (!%p1951_p11)
}
  0x67   : > { %1729 = dma.hbm_to_vmem [thread:$0]  (!%p2254_p12), %s508_s14, 16, %s511_s27, %s483_s18  }
  0x68   : > { %s537_s10 = scalar_lea.vmem [#allocation12], %s2282_s29  ;;  %s2582_s4 = sshll.u32 %s2282_s29, 2 }
  0x69   : > { %s544_s11 = sshll.u32 %s537_s10, 4  ;;  %s555_s26 = scalar_lea.vmem [#allocation13], %s2582_s4  ;;  %s545_s11 = int_to_ptr.vmem [resolvable:$true] %s544_s11 }
  0x6a   : > { %s562_s24 = sshll.u32 %s555_s26, 4  ;;  %s1968_s0 = scalar_lea.vmem %s545_s11, 16  ;;  %s563_s24 = int_to_ptr.vmem [resolvable:$true] %s562_s24 }
  0x6b   : > { %p1969_p10 = scmp.ne.s32.totalorder %s545_s11, %s1968_s0  ;;  %s2112_s2 = smov [#allocation12]  }
  0x6c   : > { %s1973_s23 = sshll.u32 %s2112_s2, 4  ;;  %s1974_s23 = int_to_ptr.vmem [resolvable:$false] %s1973_s23 }
  0x6d   : > { %p1971_p1 = pnand %p1969_p10, %p2299_p13  ;;  %s1975_s9 = scalar_lea.vmem %s1974_s23, 32 }
  0x6e   : > { %p1976_p2 = scmp.lt.s32.totalorder %s545_s11, %s1974_s23  ;;  %p1977_p4 = scmp.lt.s32.totalorder %s1975_s9, %s1968_s0 }
  0x6f   : > { %p1972_p0 = pneg %p1971_p1 }
  0x70   : > { %p1978_p6 = por %p1977_p4, %p1976_p2 }
  0x72   : > { %p1979_p9 = pnand %p1978_p6, %p1972_p0 }
  0x74   : > { %1982 = shalt.err (!%p1979_p9)
}
  0x75   : > { %s2583_s14 = scalar_lea.hbm %s2545_s7, %s2315_s22  ;;  %s552_s27 = scalar_lea.sflag [#allocation14], %s2279_s28 }
  0x76   : > { %1735 = dma.hbm_to_vmem [thread:$0]  (!%p2254_p12), %s2583_s14, 16, %s545_s11, %s518_s15  }
  0x77   : > { %s1996_s12 = scalar_lea.vmem %s563_s24, 64  ;;  %s2113_s23 = smov [#allocation13]  }
  0x78   : > { %p1997_p5 = scmp.ne.s32.totalorder %s563_s24, %s1996_s12  ;;  %s2001_s10 = sshll.u32 %s2113_s23, 4  ;;  %s2002_s10 = int_to_ptr.vmem [resolvable:$false] %s2001_s10 }
  0x79   : > { %s2003_s4 = scalar_lea.vmem %s2002_s10, 128  ;;  %p2004_p1 = scmp.lt.s32.totalorder %s563_s24, %s2002_s10 }
  0x7a   : > { %p1999_p11 = pnand %p1997_p5, %p2299_p13  ;;  %p2005_p0 = scmp.lt.s32.totalorder %s2003_s4, %s1996_s12 }
  0x7c   : > { %p2000_p10 = pneg %p1999_p11  ;;  %p2006_p2 = por %p2005_p0, %p2004_p1 }
  0x7e   : > { %p2007_p4 = pnand %p2006_p2, %p2000_p10 }
  0x80   : > { %2010 = shalt.err (!%p2007_p4)
}
  0x81   : > { %1738 = dma.hbm_to_vmem [thread:$0]  (!%p2254_p12), %s2312_s13, 64, %s563_s24, %s552_s27  }
  0x82   : > { %571 = sbr.rel (%p2241_p8) target bundleno = 1721 (0x6b9), region = 76 }
  0x87   : > { %2060 = dma.done.wait (%p167_p3), [#allocation5], 128  }
  0x88   : > { %2062 = vsyncadd (%p167_p3), [#allocation5], 4294967168  ;;  %s577_s3 = sand.u32 1, %s2226_s19   ;;  %s2385_s15 = sand.u32 1, %s2089_s30  }
  0x89   : > { %s1564_s28 = sshll.u32 %s2385_s15, 2  ;;  %s578_s25 = scalar_lea.sflag [#allocation8], %s577_s3 }
  0x8a   : > { %s2388_s22 = scalar_lea.vmem [#allocation7], %s1564_s28 }
  0x8b   : > { %2064 = dma.done.wait (%p2237_p7), %s578_s25, 80  }
  0x8c   : > { %2066 = vsyncadd (%p2237_p7), %s578_s25, 4294967216  ;;  %s589_s21 = scalar_lea.vmem [#allocation9], %s2385_s15  ;;  %s595_s13 = scalar_lea.sflag [#allocation11], %s577_s3 }
  0x8d   : > { %s597_s11 = scalar_lea.vmem [#allocation10], %s2385_s15 }
  0x8e   : > { %2068 = dma.done.wait (%p2237_p7), %s595_s13, 32  }
  0x8f   : > { %2070 = vsyncadd (%p2237_p7), %s595_s13, 4294967264  ;;  %s605_s26 = scalar_lea.vmem [#allocation12], %s2385_s15  ;;  %s611_s24 = scalar_lea.sflag [#allocation14], %s577_s3 }
  0x90   : > { %s2401_s0 = scalar_lea.vmem [#allocation13], %s1564_s28 }
  0x91   : > { %2072 = dma.done.wait (%p2237_p7), %s611_s24, 64  }
  0x92   : > { %2074 = vsyncadd (%p2237_p7), %s611_s24, 4294967232 }
  0x93   : > { %2076 = dma.done.wait (%p167_p3), [#allocation14], 16  }
  0x94   : > { %2078 = vsyncadd (%p167_p3), [#allocation14], 4294967280  ;;  %p694_p8 = scmp.lt.s32.totalorder %s2097_s16, 3  ;;  %s2584_s14 = sld [smem:[#allocation28_spill]] }
  0x95   : > { %s2585_s10 = sld [smem:[#allocation29_spill]]  ;;  %p1569_p7 = scmp.ne.s32.totalorder %s2097_s16, 0 }
  0x96   : > { %s695_s2 = scalar_select %p694_p8, %s2097_s16, 3 }
  0x97   : > { %707 = sbr.rel (%p1569_p7) target bundleno = 163 (0xa3), region = 108  ;;  %s2586_s28 = sld [smem:[#allocation27_spill]] (!%p1569_p7) }
  0x98   : > { %s1567_s9 = sshll.u32 %s695_s2, 2 }
  0x9a   : > { %s697_s27 = scalar_lea.vmem %s2584_s14, %s1567_s9 }
  0x9b   : > { %s701_s20 = scalar_lea.vmem %s2585_s10, %s1567_s9 }
  0x9c   : > { %v710_v1 = vld [vmem:[#allocation4] sm:$0xff]  ;;  %vm724_vm0 = vcmask 261120   ;;  %v2114_v5 = vmov 0.0   ;;  %vm721_vm1 = vcmask 257024  }
  0x9d   : > { %v708_v0 = vld [vmem:[%s2586_s28] sm:$0xff]  ;;  %v709_v2 = vld [vmem:[%s2586_s28 + $0x8] sm:$0xff]  ;;  %725 = vst.msk [vmem:[#allocation3] sm:$0xff] %vm724_vm0, %v2114_v5  ;;  %726 = vst.msk [vmem:[#allocation3 + $0x8] sm:$0xff] %vm724_vm0, %v2114_v5 }
  0x9e   : > { %v711_v3 = vadd.f32 %v710_v1, %v708_v0  ;;  %v712_v4 = vadd.f32 %v710_v1, %v709_v2 }
  0xa0   : > { %v1600_v6 = vpack.c.bf16 %v711_v3, %v711_v3  ;;  %v1601_v7 = vpack.c.bf16 %v712_v4, %v712_v4 }
  0xa2   : > { %722 = vst.msk [vmem:[#allocation2] sm:$0xf] %vm721_vm1, %v1600_v6  ;;  %723 = vst.msk [vmem:[#allocation2 + $0x4] sm:$0xf] %vm721_vm1, %v1601_v7 }
  0xa3 PF: > { %v730_v8 = vld [vmem:[%s701_s20] sm:$0xf]  ;;  %vm744_vm2 = vcmask 261120   ;;  %v2115_v10 = vmov 0.0   ;;  %vm2116_vm3 = vmmov 0   ;;  %vm900_vm4 = vcmask 64512  }
  0xa4   : > { %v729_v9 = vld [vmem:[%s697_s27] sm:$0xf]  ;;  %1632 = vmatprep.subr.bf16.mxu1 %v2115_v10  ;;  %v800_v11 = vsel %vm744_vm2, %v730_v8, 0  ;;  %1626 = vmatprep.subr.bf16.mxu0 %v2115_v10  ;;  %vm1022_vm5 = vcmask 1043456   ;;  %p1584_p3 = scmp.ne.s32.totalorder %s2097_s16, 3 }
  0xa5   : > { %v749_v12 = vsel %vm744_vm2, %v729_v9, 0  ;;  %1633 = vmatpush3.bf16.xpose.msra.mxu1 %v800_v11  ;;  %1634 = vmatprep.mubr.msk.bf16.mxu1 %vm2116_vm3, %v2115_v10  ;;  %v731_v13 = vld [vmem:[%s2388_s22] sm:$0xf]  ;;  %s2589_s10 = sld [smem:[#allocation33_spill]] (!%p1584_p3) }
  0xa6   : > { %1627 = vmatpush3.bf16.xpose.msra.mxu0 %v749_v12  ;;  %1628 = vmatprep.mubr.msk.bf16.mxu0 %vm2116_vm3, %v2115_v10  ;;  %v851_v15 = vsel %vm744_vm2, %v731_v13, 0  ;;  %v1575_v16 = vld [vmem:[%s597_s11] ss:$0 sm:$0xff]  ;;  %s2590_s3 = sld [smem:[#allocation35_spill]] (!%p1584_p3) }
  0xa7   : > { %1638 = vmatprep.subr.bf16.mxu0 %v2115_v10  ;;  %1644 = vmatprep.subr.bf16.mxu1 %v2115_v10  ;;  %v1572_v21 = vld [vmem:[%s589_s21] ss:$0 sm:$0xff]  ;;  %s2587_s21 = sld [smem:[#allocation32_spill]] (!%p1584_p3) }
  0xa8   : > { %v1577_v31 = vld [vmem:[%s605_s26] ss:$0 sm:$0xff] }
  0xa9   : > { %v1804_v14 = vld [vmem:[#allocation2] sm:$0xff]  }
  0xac   : > { %1635 = vmatmul.mubr.msk.bf16.vlgmr.msra.gmra.mxu1 %vm744_vm2, %v1804_v14 }
  0xad   : > { %1629 = vmatmul.mubr.msk.bf16.vlgmr.msra.gmra.mxu0 %vm744_vm2, %v1804_v14  ;;  %1646 = vmatprep.mubr.msk.bf16.mxu1 %vm2116_vm3, %v2115_v10 }
  0xae   : > { %1639 = vmatpush3.bf16.xpose.msra.mxu0 %v851_v15  ;;  %1640 = vmatprep.mubr.msk.bf16.mxu0 %vm2116_vm3, %v2115_v10 }
  0xaf   : > { %1650 = vmatprep.subr.bf16.mxu0 %v2115_v10 }
  0xb5   : > { %1641 = vmatmul.mubr.msk.bf16.vlgmr.msra.gmra.mxu0 %vm744_vm2, %v1804_v14  ;;  %v1115_v14 = vld [vmem:[%s2401_s0] sm:$0xf]  ;;  %s2588_s0 = sld [smem:[#allocation34_spill]] (!%p1584_p3) }
  0xb6   : > { %1652 = vmatprep.mubr.msk.bf16.mxu0 %vm2116_vm3, %v2115_v10  ;;  %v1120_v15 = vsel %vm1022_vm5, %v1115_v14, 0 }
 0x16c   : > { %v836_v17 = vpop.f32.mrf.mxu1 }
 0x16d   : > { %v785_v18 = vpop.f32.mrf.mxu0  ;;  %v837_v19 = vadd.f32 %v1575_v16, %v836_v17 }
 0x16e   : > { %v1636_v20 = vpop.f32.mrf.mxu1  ;;  %v786_v27 = vadd.f32 %v1572_v21, %v785_v18 }
 0x16f   : > { %v1630_v22 = vpop.f32.mrf.mxu0  ;;  %v896_v23 = vpack.c.bf16 %v837_v19, %v837_v19 }
 0x170   : > { %v839_v24 = vpop.f32.mrf.mxu1  ;;  %v894_v34 = vpack.c.bf16 %v786_v27, %v786_v27 }
 0x171   : > { %v788_v25 = vpop.f32.mrf.mxu0  ;;  %v905_v26 = vsel %vm900_vm4, %v896_v23, 0  ;;  %v840_v28 = vadd.f32 %v1575_v16, %v839_v24 }
 0x172   : > { %v1637_v29 = vpop.f32.mrf.mxu1  ;;  %1645 = vmatpush3.bf16.xpose.msra.mxu1 %v905_v26  ;;  %v789_v38 = vadd.f32 %v1572_v21, %v788_v25  ;;  %v1113_v25 = vld [vmem:[#allocation3] sm:$0xff] }
 0x173   : > { %v1631_v30 = vpop.f32.mrf.mxu0  ;;  %v897_v32 = vpack.c.bf16 %v840_v28, %v840_v28  ;;  %1656 = vmatprep.subr.bf16.mxu1 %v2115_v10  ;;  %v1114_v28 = vld [vmem:[#allocation3 + $0x8] sm:$0xff] }
 0x174   : > { %v895_v44 = vpack.c.bf16 %v789_v38, %v789_v38 }
 0x175   : > { %v887_v33 = vpop.f32.mrf.mxu0  ;;  %v951_v35 = vsel %vm900_vm4, %v897_v32, 0 }
 0x176   : > { %v888_v36 = vadd.f32 %v1577_v31, %v887_v33  ;;  %1651 = vmatpush3.bf16.xpose.msra.mxu0 %v951_v35 }
 0x177   : > { %v1642_v37 = vpop.f32.mrf.mxu0  ;;  %1662 = vmatprep.subr.bf16.mxu0 %v2115_v10 }
 0x178   : > { %v898_v39 = vpack.c.bf16 %v888_v36, %v888_v36 }
 0x179   : > { %v890_v40 = vpop.f32.mrf.mxu0  ;;  %1647 = vmatmul.mubr.msk.bf16.vlgmr.msra.gmra.mxu1 %vm900_vm4, %v894_v34 }
 0x17a   : > { %v1024_v41 = vsel %vm1022_vm5, %v898_v39, 0  ;;  %v891_v42 = vadd.f32 %v1577_v31, %v890_v40  ;;  %1658 = vmatprep.mubr.msk.bf16.mxu1 %vm2116_vm3, %v2115_v10 }
 0x17b   : > { %v1643_v43 = vpop.f32.mrf.mxu0  ;;  %1657 = vmatpush3.bf16.msra.mxu1 %v1024_v41 }
 0x17c   : > { %v899_v45 = vpack.c.bf16 %v891_v42, %v891_v42  ;;  %1668 = vmatprep.subr.bf16.mxu1 %v2115_v10 }
 0x17d   : > { %1653 = vmatmul.mubr.msk.bf16.vlgmr.msra.gmra.mxu0 %vm900_vm4, %v895_v44 }
 0x17e   : > { %v1070_v46 = vsel %vm1022_vm5, %v899_v45, 0  ;;  %1664 = vmatprep.mubr.msk.bf16.mxu0 %vm2116_vm3, %v2115_v10 }
 0x17f   : > { %1663 = vmatpush3.bf16.msra.mxu0 %v1070_v46 }
 0x239   : > { %v941_v47 = vpop.f32.mrf.mxu1 }
 0x23a   : > { %v993_v48 = vmul.f32 0.35355338, %v941_v47 }
 0x23b   : > { %v1648_v49 = vpop.f32.mrf.mxu1 }
 0x23c   : > { %v995_v50 = vsel %vm900_vm4, %v993_v48, -inf }
 0x23d   : > { %996 = vmax.xlane.f32.xlu0 %v995_v50  ;;  %v944_v51 = vpop.f32.mrf.mxu1  ;;  %v987_v52 = vpop.f32.mrf.mxu0 }
 0x23e   : > { %v994_v53 = vmul.f32 0.35355338, %v987_v52 }
 0x23f   : > { %v1649_v54 = vpop.f32.mrf.mxu1  ;;  %v1654_v55 = vpop.f32.mrf.mxu0 }
 0x240   : > { %v998_v56 = vsel %vm900_vm4, %v994_v53, -inf }
 0x241   : > { %999 = vmax.xlane.f32.xlu0 %v998_v56  ;;  %v990_v57 = vpop.f32.mrf.mxu0 }
 0x243   : > { %v1655_v58 = vpop.f32.mrf.mxu0 }
 0x2c6   : > { %v997_v59 = vpop.xlane.xlu0 %996 }
 0x2c7   : > { %v1001_v60 = vsub.f32 %v993_v48, %v997_v59 }
 0x2c9   : > { %v1003_v61 = vmul.f32 1.442695, %v1001_v60 }
 0x2ca   : > { %v1000_v62 = vpop.xlane.xlu0 %999 }
 0x2cb   : > { %1805 = vpow2.f32 %v1003_v61  ;;  %v1002_v63 = vsub.f32 %v994_v53, %v1000_v62 }
 0x2cd   : > { %v1005_v0 = vmul.f32 1.442695, %v1002_v63 }
 0x2cf   : > { %1807 = vpow2.f32 %v1005_v0 }
 0x2d8   : > { %v1806_v1 = vpop.eup %1805 }
 0x2d9   : > { %v1007_v2 = vsel %vm900_vm4, %v1806_v1, 0.0 }
 0x2da   : > { %1008 = vadd.xlane.f32.xlu1 %v1007_v2 }
 0x2dc   : > { %v1808_v3 = vpop.eup %1807 }
 0x2dd   : > { %v1010_v4 = vsel %vm900_vm4, %v1808_v3, 0.0 }
 0x2de   : > { %1011 = vadd.xlane.f32.xlu1 %v1010_v4 }
 0x363   : > { %v1009_v5 = vpop.xlane.xlu1 %1008 }
 0x364   : > { %1809 = vrcp.f32 %v1009_v5 }
 0x367   : > { %v1012_v6 = vpop.xlane.xlu1 %1011 }
 0x368   : > { %1811 = vrcp.f32 %v1012_v6 }
 0x371   : > { %v1810_v7 = vpop.eup %1809 }
 0x372   : > { %v1015_v8 = vmul.f32 %v1810_v7, %v1806_v1 }
 0x374   : > { %v1017_v9 = vpack.c.bf16 %v1015_v8, %v1015_v8 }
 0x375   : > { %v1812_v11 = vpop.eup %1811 }
 0x376   : > { %1659 = vmatmul.mubr.msk.bf16.vlgmr.msra.gmra.mxu1 %vm900_vm4, %v1017_v9  ;;  %v1016_v12 = vmul.f32 %v1812_v11, %v1808_v3 }
 0x377   : > { %1670 = vmatprep.mubr.msk.bf16.mxu1 %vm2116_vm3, %v2115_v10  ;;  %1669 = vmatpush3.bf16.msra.mxu1 %v1120_v15 }
 0x378   : > { %v1018_v13 = vpack.c.bf16 %v1016_v12, %v1016_v12 }
 0x37a   : > { %1665 = vmatmul.mubr.msk.bf16.vlgmr.msra.gmra.mxu0 %vm900_vm4, %v1018_v13 }
 0x436   : > { %v1060_v16 = vpop.f32.mrf.mxu1 }
 0x438   : > { %v1660_v17 = vpop.f32.mrf.mxu1 }
 0x43a   : > { %v1063_v18 = vpop.f32.mrf.mxu1  ;;  %v1106_v19 = vpop.f32.mrf.mxu0 }
 0x43b   : > { %v1112_v20 = vpack.c.bf16 %v1106_v19, %v1060_v16 }
 0x43c   : > { %v1661_v21 = vpop.f32.mrf.mxu1  ;;  %v1666_v22 = vpop.f32.mrf.mxu0 }
 0x43d   : > { %1671 = vmatmul.mubr.msk.bf16.vlgmr.msra.gmra.mxu1 %vm900_vm4, %v1112_v20 }
 0x43e   : > { %v1109_v23 = vpop.f32.mrf.mxu0 }
 0x440   : > { %v1667_v24 = vpop.f32.mrf.mxu0 }
 0x4fd   : > { %v1156_v10 = vpop.f32.mrf.mxu1 }
 0x4fe   : > { %v1163_v26 = vadd.f32 %v1156_v10, %v1113_v25 }
 0x4ff   : > { %v1672_v27 = vpop.f32.mrf.mxu1 }
 0x500   : > { %1165 = vst.msk [vmem:[#allocation3] sm:$0xff] %vm744_vm2, %v1163_v26  ;;  %1170 = sbr.rel (%p1584_p3) target bundleno = 1699 (0x6a3), region = 112 }
 0x501   : > { %v1159_v29 = vpop.f32.mrf.mxu1 }
 0x502   : > { %v1164_v30 = vadd.f32 %v1159_v29, %v1114_v28 }
 0x503   : > { %v1673_v31 = vpop.f32.mrf.mxu1 }
 0x504   : > { %1166 = vst.msk [vmem:[#allocation3 + $0x8] sm:$0xff] %vm744_vm2, %v1164_v30 }
 0x505   : > { %v1813_v32 = vld [vmem:[%s2587_s21 + $0x8] sm:$0xff]   ;;  %v2117_v33 = vmov 0.0   ;;  %v1814_v34 = vld [vmem:[%s2587_s21] sm:$0xff]   ;;  %vm2118_vm6 = vmmov 0   ;;  %v1585_v37 = vld [vmem:[#allocation15] ss:$0 sm:$0xff] }
 0x506   : > { %1674 = vmatprep.subr.bf16.mxu0 %v2117_v33  ;;  %1682 = vmatprep.subr.bf16.mxu1 %v2117_v33  ;;  %v1815_v40 = vld [vmem:[%s2588_s0 + $0x18] sm:$0xff]   ;;  %v1816_v42 = vld [vmem:[%s2588_s0 + $0x10] sm:$0xff]   ;;  %v1817_v43 = vld [vmem:[%s2588_s0 + $0x8] sm:$0xff]   ;;  %vm1292_vm7 = vcmask 523264  }
 0x507   : > { %1675 = vmatpush3.bf16.msra.mxu0 %v1813_v32  ;;  %1678 = vmatprep.mubr.msk.bf16.mxu0 %vm2118_vm6, %v2117_v33  ;;  %v1171_v35 = vld [vmem:[#allocation3] sm:$0xff]  ;;  %v1818_v44 = vld [vmem:[%s2588_s0] sm:$0xff]  }
 0x508   : > { %1676 = vmatprep.subr.bf16.mxu0 %v2117_v33  ;;  %v1180_v38 = vadd.f32 %v1585_v37, %v1171_v35  ;;  %1690 = vmatprep.mubr.msk.bf16.mxu1 %vm2118_vm6, %v2117_v33  ;;  %v1586_v45 = vld [vmem:[%s2589_s10] ss:$0 sm:$0xff] }
 0x509   : > { %1683 = vmatpush3.bf16.msra.mxu1 %v1815_v40  ;;  %v1590_v55 = vld [vmem:[%s2590_s3] ss:$0 sm:$0xff] }
 0x50a   : > { %1684 = vmatprep.subr.bf16.mxu1 %v2117_v33 }
 0x50b   : > { %v1172_v36 = vld [vmem:[#allocation3 + $0x8] sm:$0xff]  ;;  %1677 = vmatpush3.bf16.msra.mxu0 %v1814_v34 }
 0x50c   : > { %v1181_v39 = vadd.f32 %v1585_v37, %v1172_v36 }
 0x50d   : > { %1685 = vmatpush3.bf16.msra.mxu1 %v1816_v42 }
 0x50e   : > { %v1182_v41 = vpack.c.bf16 %v1181_v39, %v1180_v38  ;;  %1686 = vmatprep.subr.bf16.mxu1 %v2117_v33 }
 0x510   : > { %1679 = vmatmul.mubr.msk.bf16.vlgmr.msra.gmra.mxu0 %vm744_vm2, %v1182_v41 }
 0x511   : > { %1687 = vmatpush3.bf16.msra.mxu1 %v1817_v43 }
 0x512   : > { %1688 = vmatprep.subr.bf16.mxu1 %v2117_v33 }
 0x515   : > { %1689 = vmatpush3.bf16.msra.mxu1 %v1818_v44 }
 0x5d0   : > { %v1243_v46 = vpop.f32.mrf.mxu0 }
 0x5d1   : > { %v1244_v48 = vadd.f32 %v1586_v45, %v1243_v46 }
 0x5d2   : > { %v1680_v47 = vpop.f32.mrf.mxu0 }
 0x5d3   : > { %v1250_v52 = vmax.f32 %v1244_v48, 0.0 }
 0x5d4   : > { %v1246_v49 = vpop.f32.mrf.mxu0 }
 0x5d5   : > { %v1247_v50 = vadd.f32 %v1586_v45, %v1246_v49 }
 0x5d6   : > { %v1681_v51 = vpop.f32.mrf.mxu0 }
 0x5d7   : > { %v1251_v53 = vmax.f32 %v1247_v50, 0.0 }
 0x5d9   : > { %v1252_v54 = vpack.c.bf16 %v1251_v53, %v1250_v52 }
 0x5db   : > { %1691 = vmatmul.mubr.msk.bf16.vlgmr.msra.gmra.mxu1 %vm1292_vm7, %v1252_v54 }
 0x69b   : > { %v1330_v56 = vpop.f32.mrf.mxu1 }
 0x69c   : > { %v1331_v57 = vadd.f32 %v1590_v55, %v1330_v56 }
 0x69d   : > { %v1692_v58 = vpop.f32.mrf.mxu1 }
 0x69e   : > { %1337 = vst.msk [vmem:[#allocation16] sm:$0xff] %vm744_vm2, %v1331_v57 }
 0x69f   : > { %v1333_v59 = vpop.f32.mrf.mxu1 }
 0x6a0   : > { %v1334_v60 = vadd.f32 %v1590_v55, %v1333_v59 }
 0x6a1   : > { %v1693_v61 = vpop.f32.mrf.mxu1 }
 0x6a2   : > { %1338 = vst.msk [vmem:[#allocation16 + $0x8] sm:$0xff] %vm744_vm2, %v1334_v60 }
 0x6a3 PF: > { %p1744_p12 = scmp.eq.s32.totalorder %s2226_s19, 3  ;;  %s2119_s25 = smov [#allocation16]  }
 0x6a4   : > { %s1348_s13 = sshll.u32 %s2119_s25, 4  ;;  %s1349_s13 = int_to_ptr.vmem [resolvable:$true] %s1348_s13 }
 0x6a5   : > { %s2011_s15 = scalar_lea.vmem %s1349_s13, 256  ;;  %p2018_p5 = scmp.lt.s32.totalorder %s1349_s13, %s1349_s13 }
 0x6a6   : > { %p2012_p13 = scmp.ne.s32.totalorder %s1349_s13, %s2011_s15  ;;  %p2019_p11 = scmp.lt.s32.totalorder %s2011_s15, %s2011_s15 }
 0x6a8   : > { %p2013_p6 = pnand %p2012_p13, %p1744_p12  ;;  %p2020_p10 = por %p2019_p11, %p2018_p5 }
 0x6aa   : > { %p2014_p9 = pneg %p2013_p6 }
 0x6ac   : > { %p2021_p1 = pnand %p2020_p10, %p2014_p9 }
 0x6ae   : > { %2024 = shalt.err (!%p2021_p1)
}
 0x6af   : > { %s2120_s22 = smov 128   ;;  %s2121_s11 = smov 8  }
 0x6b0   : > { %s2591_s24 = sld [smem:[#allocation36_spill]] }
 0x6b6   : > { %1713 = dma.vmem_to_hbm [thread:$0]  (%p1744_p12), %s1349_s13, 256, %s2591_s24, [#allocation6], %s2120_s22, %s2120_s22, %s2121_s11  }
 0x6b7   : > { %2080 = dma.done.wait (%p1744_p12), [#allocation6], 256  }
 0x6b8   : > { %2082 = vsyncadd (%p1744_p12), [#allocation6], 4294967040 }
 0x6b9 PF: > { %s2592_s2 = sld [smem:[#allocation24_spill]]  ;;  %s2596_s29 = smov %s2089_s30 }
 0x6ba   : > { %s2593_s9 = sld [smem:[#allocation23_spill]]  ;;  %s2598_s16 = smov %s2101_s17 }
 0x6bb   : > { %s2594_s15 = sld [smem:[#allocation26_spill]] }
 0x6bc   : > { %s2595_s14 = sld [smem:[#allocation25_spill]] }
 0x6bf   : > { %s35_s18 = sadd.s32 1, %s2592_s2  }
 0x6c0   : > { %p32_p0 = scmp.ge.s32.totalorder %s35_s18, 6   ;;  %s2597_s30 = smov %s2593_s9 }
 0x6c2   : > { %s2599_s17 = smov %s2595_s14  ;;  %34 = sbr.rel (!%p32_p0) target bundleno = 21 (0x15), region = 188 }
 0x6c7   :  { %1364 = vsyncpa [#allocation5], 1 }
 0x6c8   :  { %1366 = vsyncpa [#allocation5 + $0x1], 1 }
 0x6c9   :  { %1367 = vsyncpa [#allocation8], 1 }
 0x6ca   :  { %1369 = vsyncpa [#allocation8 + $0x1], 1 }
 0x6cb   :  { %1370 = vsyncpa [#allocation11], 1 }
 0x6cc   :  { %1372 = vsyncpa [#allocation11 + $0x1], 1 }
 0x6cd   :  { %1373 = vsyncpa [#allocation14], 1 }
 0x6ce   :  { %1375 = vsyncpa [#allocation14 + $0x1], 1 }
 0x6cf   :  { %1376 = vsyncpa [#allocation6], 1 }
 0x6d0   :  { %1378 = vsyncpa [#allocation6 + $0x1], 1 }

</bundles_post_ra>
